<compile_context>
chip_gen: v6e
topology: v6e:2x2x1
jax: 0.10.0
libtpu: 0.0.40
codegen_flags: <defaults>
</compile_context>

<pallas_src>
import functools
import math

import jax
import jax.numpy as jnp
from jax import lax
from jax.experimental import pallas as pl
from jax.experimental.pallas import tpu as pltpu


def _round_up(a, b):
    return ((a + b - 1) // b) * b


def _sublane_multiple(dtype):
    # Native second-to-last tile dim: 8 for 4-byte, 16 for 2-byte, 32 for 1-byte.
    return {4: 8, 2: 16, 1: 32}.get(jnp.dtype(dtype).itemsize, 8)


def _gelu_tanh(x):
    # tanh-approx GELU: the transcendental goes to the EUP slot (nearly free).
    c = math.sqrt(2.0 / math.pi)
    return 0.5 * x * (1.0 + jnp.tanh(c * (x + 0.044715 * (x * x * x))))


def _gelu_exact(x):
    # Exact GELU (matches torch.nn.GELU default), VALU-heavy erf polynomial.
    return 0.5 * x * (1.0 + lax.erf(x * (1.0 / math.sqrt(2.0))))


def _vmem_capacity_bytes():
    try:
        return int(pltpu.get_tpu_info().vmem_capacity_bytes)
    except Exception:
        return 64 * 1024 * 1024  # conservative fallback (v7x per-TC VMEM)


def _single_buffered_spec(shape, index_map):
    # Constant-index operand: one VMEM copy instead of the default double buffer.
    try:
        return pl.BlockSpec(shape, index_map, pipeline_mode=pl.Buffered(1))
    except TypeError:  # older jax without pipeline_mode kwarg
        return pl.BlockSpec(shape, index_map)


def _make_resident_kernel(n_sub, sub_m, gelu_fn):
    """Whole MLP fused; W1/W2 resident in VMEM; row-sub-tiled for MXU/VPU overlap."""

    def kernel(x_ref, w1_ref, b1_ref, w2_ref, b2_ref, o_ref):
        b1 = b1_ref[...].astype(jnp.float32)   # (1, H) hoisted broadcasts
        b2 = b2_ref[...].astype(jnp.float32)   # (1, D)
        for k in range(n_sub):                 # independent chunks -> units overlap
            rows = pl.ds(k * sub_m, sub_m)
            h = jnp.dot(x_ref[rows, :], w1_ref[...],
                        preferred_element_type=jnp.float32)
            h = gelu_fn(h + b1)
            y = jnp.dot(h.astype(w2_ref.dtype), w2_ref[...],
                        preferred_element_type=jnp.float32)
            # Dropout: identity in eval mode.
            # TODO(synk): training-mode dropout would use pltpu.prng_random_bits.
            o_ref[rows, :] = (y + b2).astype(o_ref.dtype)

    return kernel


def _make_hblocked_kernel(n_sub, sub_m, gelu_fn):
    """Weight-streaming path: H (hidden) is a reduction grid axis; f32 acc scratch."""

    def kernel(x_ref, w1_ref, b1_ref, w2_ref, b2_ref, o_ref, acc_ref):
        j = pl.program_id(1)

        @pl.when(j == 0)
        def _():
            acc_ref[...] = jnp.zeros_like(acc_ref)

        b1 = b1_ref[...].astype(jnp.float32)   # (1, th)
        for k in range(n_sub):
            rows = pl.ds(k * sub_m, sub_m)
            h = jnp.dot(x_ref[rows, :], w1_ref[...],
                        preferred_element_type=jnp.float32)
            h = gelu_fn(h + b1)
            acc_ref[rows, :] += jnp.dot(h.astype(w2_ref.dtype), w2_ref[...],
                                        preferred_element_type=jnp.float32)

        @pl.when(j == pl.num_programs(1) - 1)
        def _():
            o_ref[...] = (acc_ref[...] + b2_ref[...].astype(jnp.float32)
                          ).astype(o_ref.dtype)

    return kernel


def mlp_forward(x, w1, b1, w2, b2, *, tm=512, th=512, gelu_approximate=True,
                compute_dtype=None, force_h_blocked=False,
                weight_residency_fraction=0.45):
    """x: [B, T, D]; w1: [D, H]; b1: [H]; w2: [H, D]; b2: [D].

    compute_dtype controls the MXU operand dtype (bf16 recommended on TPU);
    accumulation, bias-add and GELU always run in f32.
    """
    B, T, D = x.shape
    H = w1.shape[1]
    assert w1.shape == (D, H) and w2.shape == (H, D)
    assert b1.shape == (H,) and b2.shape == (D,)
    assert th % 128 == 0
    M = B * T
    out_dtype = x.dtype

    compute_dtype = jnp.dtype(compute_dtype if compute_dtype is not None else x.dtype)
    isz = compute_dtype.itemsize
    sub_mult = _sublane_multiple(compute_dtype)
    gelu_fn = _gelu_tanh if gelu_approximate else _gelu_exact

    # Lane-dense padding of the feature dims (multiples of 128).
    D_pad = _round_up(D, 128)
    H_pad128 = _round_up(H, 128)

    cap = _vmem_capacity_bytes()
    budget = int(cap * 0.9)  # leave headroom below the physical per-TC VMEM

    resident_weight_bytes = (2 * D_pad * H_pad128 + H_pad128 + D_pad) * isz
    use_resident = (not force_h_blocked) and (
        resident_weight_bytes <= weight_residency_fraction * cap)

    if use_resident:
        H_pad = H_pad128
        h_width = H_pad
    else:
        H_pad = _round_up(H, th)   # zero-padded hidden cols: gelu(0)=0, contributes 0
        h_width = th

    def _vmem_estimate(tm_v):
        sub = 128 if tm_v % 128 == 0 else tm_v
        act = 2 * 2 * tm_v * D_pad * isz              # x + out tiles, double-buffered
        interm = 2 * sub * (h_width + D_pad) * 4      # live f32 sub-chunk intermediates
        if use_resident:
            w = resident_weight_bytes                  # single-buffered (Buffered(1))
        else:
            w = 2 * (D_pad * th + th + th * D_pad) * isz + D_pad * isz
            act += tm_v * D_pad * 4                    # f32 accumulator scratch
        return int((w + act + interm) * 1.2) + (2 << 20)

    # Row tile: big for MXU utilization, rounded to the dtype sublane multiple,
    # shrunk until the VMEM estimate fits.
    m_rounded = _round_up(M, sub_mult)
    tm_eff = max(sub_mult, min(_round_up(tm, sub_mult), m_rounded))
    while tm_eff > sub_mult and _vmem_estimate(tm_eff) > budget:
        tm_eff = max(sub_mult, _round_up(tm_eff // 2, sub_mult))
    # v7x has 2 TensorCores: make sure the "parallel" grid has >= 2 steps when possible.
    if tm_eff >= m_rounded and m_rounded >= 2 * sub_mult:
        tm_eff = _round_up((m_rounded + 1) // 2, sub_mult)

    sub_m = 128 if tm_eff % 128 == 0 else tm_eff
    n_sub = tm_eff // sub_m
    grid_m = pl.cdiv(M, tm_eff)     # ragged last block handled by Pallas masking

    vmem_limit = min(max(_vmem_estimate(tm_eff), 32 * 1024 * 1024), budget)

    # One dtype cast for all MXU operands (no per-iteration casts in the kernel).
    x2d = x.reshape(M, D).astype(compute_dtype)
    if D_pad != D:
        x2d = jnp.pad(x2d, ((0, 0), (0, D_pad - D)))
    w1_p = jnp.pad(w1.astype(compute_dtype), ((0, D_pad - D), (0, H_pad - H)))
    w2_p = jnp.pad(w2.astype(compute_dtype), ((0, H_pad - H), (0, D_pad - D)))
    b1_p = jnp.pad(b1.astype(compute_dtype), (0, H_pad - H)).reshape(1, H_pad)
    b2_p = jnp.pad(b2.astype(compute_dtype), (0, D_pad - D)).reshape(1, D_pad)

    if use_resident:
        kernel = _make_resident_kernel(n_sub, sub_m, gelu_fn)
        grid = (grid_m,)
        in_specs = [
            pl.BlockSpec((tm_eff, D_pad), lambda i: (i, 0)),                 # x tile
            _single_buffered_spec((D_pad, H_pad), lambda i: (0, 0)),         # W1
            _single_buffered_spec((1, H_pad), lambda i: (0, 0)),             # b1
            _single_buffered_spec((H_pad, D_pad), lambda i: (0, 0)),         # W2
            _single_buffered_spec((1, D_pad), lambda i: (0, 0)),             # b2
        ]
        out_spec = pl.BlockSpec((tm_eff, D_pad), lambda i: (i, 0))
        scratch = []
        dims = ("parallel",)
    else:
        kernel = _make_hblocked_kernel(n_sub, sub_m, gelu_fn)
        grid = (grid_m, H_pad // th)     # reduction axis last
        in_specs = [
            pl.BlockSpec((tm_eff, D_pad), lambda i, j: (i, 0)),              # x tile
            pl.BlockSpec((D_pad, th), lambda i, j: (0, j)),                  # W1 block
            pl.BlockSpec((1, th), lambda i, j: (0, j)),                      # b1 block
            pl.BlockSpec((th, D_pad), lambda i, j: (j, 0)),                  # W2 block
            _single_buffered_spec((1, D_pad), lambda i, j: (0, 0)),          # b2
        ]
        out_spec = pl.BlockSpec((tm_eff, D_pad), lambda i, j: (i, 0))
        scratch = [pltpu.VMEM((tm_eff, D_pad), jnp.float32)]
        dims = ("parallel", "arbitrary")

    out2d = pl.pallas_call(
        kernel,
        out_shape=jax.ShapeDtypeStruct((M, D_pad), out_dtype),
        grid_spec=pltpu.PrefetchScalarGridSpec(
            num_scalar_prefetch=0,
            grid=grid,
            in_specs=in_specs,
            out_specs=out_spec,
            scratch_shapes=scratch,
        ),
        compiler_params=pltpu.CompilerParams(
            dimension_semantics=dims,
            vmem_limit_bytes=vmem_limit,
        ),
    )(x2d, w1_p, b1_p, w2_p, b2_p)

    if D_pad != D:
        out2d = out2d[:, :D]
    return out2d.reshape(B, T, D)


def mlp_reference(x, w1, b1, w2, b2, *, gelu_approximate=True):
    gelu_fn = _gelu_tanh if gelu_approximate else _gelu_exact
    h = gelu_fn(jnp.einsum("btd,dh->bth", x, w1) + b1)
    return jnp.einsum("bth,hd->btd", h, w2) + b2


def _make_inputs(key, B, T, D, H, dtype=jnp.float32):
    kx, k1, k2, k3, k4 = jax.random.split(key, 5)
    x = jax.random.normal(kx, (B, T, D), dtype=dtype)
    lim1, lim2 = 1.0 / math.sqrt(D), 1.0 / math.sqrt(H)
    w1 = jax.random.uniform(k1, (D, H), minval=-lim1, maxval=lim1, dtype=dtype)
    b1 = jax.random.uniform(k2, (H,), minval=-lim1, maxval=lim1, dtype=dtype)
    w2 = jax.random.uniform(k3, (H, D), minval=-lim2, maxval=lim2, dtype=dtype)
    b2 = jax.random.uniform(k4, (D,), minval=-lim2, maxval=lim2, dtype=dtype)
    return x, w1, b1, w2, b2


if __name__ == "__main__":
    key = jax.random.PRNGKey(0)
    k_a, k_b = jax.random.split(key, 2)

    # --- Test 1: small GPT-style config (n_embd=32 -> hidden=128), resident path.
    B, T, D = 2, 8, 32
    H = 4 * D
    x, w1, b1, w2, b2 = _make_inputs(k_a, B, T, D, H)

    fwd = jax.jit(functools.partial(mlp_forward, gelu_approximate=True))
    out = jax.block_until_ready(fwd(x, w1, b1, w2, b2))
    ref = mlp_reference(x, w1, b1, w2, b2, gelu_approximate=True)
    assert out.shape == (B, T, D)
    assert jnp.allclose(out, ref, atol=1e-4, rtol=1e-4), "resident path mismatch"

    # --- Test 2: exercise the H-blocked (weight-streaming) reduction path.
    D2 = 64
    H2 = 4 * D2
    x2, w1b, b1b, w2b, b2b = _make_inputs(k_b, B, T, D2, H2)
    fwd_hb = jax.jit(functools.partial(
        mlp_forward, gelu_approximate=True, force_h_blocked=True, th=128))
    out2 = jax.block_until_ready(fwd_hb(x2, w1b, b1b, w2b, b2b))
    ref2 = mlp_reference(x2, w1b, b1b, w2b, b2b, gelu_approximate=True)
    assert out2.shape == (B, T, D2)
    assert jnp.allclose(out2, ref2, atol=1e-4, rtol=1e-4), "H-blocked path mismatch"

    print("KERNEL_OK")
</pallas_src>

<mosaic_0001>
module attributes {stable_mosaic.version = 11 : i64} {
  func.func @kernel(%arg0: i32, %arg1: memref<8x128xf32, #tpu.memory_space<vmem>>, %arg2: memref<128x128xf32, #tpu.memory_space<vmem>>, %arg3: memref<1x128xf32, #tpu.memory_space<vmem>>, %arg4: memref<128x128xf32, #tpu.memory_space<vmem>>, %arg5: memref<1x128xf32, #tpu.memory_space<vmem>>, %arg6: memref<8x128xf32, #tpu.memory_space<vmem>>) attributes {dimension_semantics = [#tpu.dimension_semantics<parallel>], iteration_bounds = array<i64: 2>, scalar_prefetch = 0 : i64, scratch_operands = 0 : i64, tpu.core_type = #tpu.core_type<tc>, window_params = [{transform_indices = @transform_0, window_bounds = array<i64: 8, 128>}, {pipeline_mode = #tpu.pipeline_mode<synchronous>, transform_indices = @transform_1, window_bounds = array<i64: 128, 128>}, {pipeline_mode = #tpu.pipeline_mode<synchronous>, transform_indices = @transform_2, window_bounds = array<i64: 1, 128>}, {pipeline_mode = #tpu.pipeline_mode<synchronous>, transform_indices = @transform_3, window_bounds = array<i64: 128, 128>}, {pipeline_mode = #tpu.pipeline_mode<synchronous>, transform_indices = @transform_4, window_bounds = array<i64: 1, 128>}, {transform_indices = @transform_5, window_bounds = array<i64: 8, 128>}]} {
    %c0 = arith.constant 0 : index
    %c0_0 = arith.constant 0 : index
    %0 = vector.load %arg3[%c0, %c0_0] : memref<1x128xf32, #tpu.memory_space<vmem>>, vector<1x128xf32>
    %c0_1 = arith.constant 0 : index
    %c0_2 = arith.constant 0 : index
    %1 = vector.load %arg5[%c0_1, %c0_2] : memref<1x128xf32, #tpu.memory_space<vmem>>, vector<1x128xf32>
    %c0_3 = arith.constant 0 : index
    %c0_4 = arith.constant 0 : index
    %2 = vector.load %arg1[%c0_3, %c0_4] : memref<8x128xf32, #tpu.memory_space<vmem>>, vector<8x128xf32>
    %c0_5 = arith.constant 0 : index
    %c0_6 = arith.constant 0 : index
    %3 = vector.load %arg2[%c0_5, %c0_6] : memref<128x128xf32, #tpu.memory_space<vmem>>, vector<128x128xf32>
    %cst = arith.constant dense<0.000000e+00> : vector<8x128xf32>
    %4 = tpu.matmul %2, %3, %cst {dimension_numbers = #tpu.dot_dimension_numbers<[1], [0], [0], [1], [0, 0, 1, 1], [], []>} : vector<8x128xf32>, vector<128x128xf32>, vector<8x128xf32> -> vector<8x128xf32>
    %5 = vector.broadcast %0 : vector<1x128xf32> to vector<8x128xf32>
    %6 = arith.addf %4, %5 : vector<8x128xf32>
    %cst_7 = arith.constant 5.000000e-01 : f32
    %7 = vector.broadcast %cst_7 : f32 to vector<8x128xf32>
    %8 = arith.mulf %7, %6 : vector<8x128xf32>
    %9 = arith.mulf %6, %6 : vector<8x128xf32>
    %10 = arith.mulf %9, %6 : vector<8x128xf32>
    %cst_8 = arith.constant 4.471500e-02 : f32
    %11 = vector.broadcast %cst_8 : f32 to vector<8x128xf32>
    %12 = arith.mulf %11, %10 : vector<8x128xf32>
    %13 = arith.addf %6, %12 : vector<8x128xf32>
    %cst_9 = arith.constant 0.797884583 : f32
    %14 = vector.broadcast %cst_9 : f32 to vector<8x128xf32>
    %15 = arith.mulf %14, %13 : vector<8x128xf32>
    %16 = math.tanh %15 : vector<8x128xf32>
    %cst_10 = arith.constant 1.000000e+00 : f32
    %17 = vector.broadcast %cst_10 : f32 to vector<8x128xf32>
    %18 = arith.addf %17, %16 : vector<8x128xf32>
    %19 = arith.mulf %8, %18 : vector<8x128xf32>
    %c0_11 = arith.constant 0 : index
    %c0_12 = arith.constant 0 : index
    %20 = vector.load %arg4[%c0_11, %c0_12] : memref<128x128xf32, #tpu.memory_space<vmem>>, vector<128x128xf32>
    %cst_13 = arith.constant dense<0.000000e+00> : vector<8x128xf32>
    %21 = tpu.matmul %19, %20, %cst_13 {dimension_numbers = #tpu.dot_dimension_numbers<[1], [0], [0], [1], [0, 0, 1, 1], [], []>} : vector<8x128xf32>, vector<128x128xf32>, vector<8x128xf32> -> vector<8x128xf32>
    %22 = vector.broadcast %1 : vector<1x128xf32> to vector<8x128xf32>
    %23 = arith.addf %21, %22 : vector<8x128xf32>
    %c0_14 = arith.constant 0 : index
    %c0_15 = arith.constant 0 : index
    %24 = vector.load %arg6[%c0_14, %c0_15] : memref<8x128xf32, #tpu.memory_space<vmem>>, vector<8x128xf32>
    tpu.vector_store %arg6[%c0_14, %c0_15], %23 {strides = array<i32>} : memref<8x128xf32, #tpu.memory_space<vmem>>, vector<8x128xf32>,
    return
  }
  func.func @transform_0(%arg0: i32) -> (i32, i32) {
    %c0_i32 = arith.constant 0 : i32
    %c0_i32_0 = arith.constant 0 : i32
    return %arg0, %c0_i32 : i32, i32
  }
  func.func @transform_1(%arg0: i32) -> (i32, i32) {
    %c0_i32 = arith.constant 0 : i32
    %c0_i32_0 = arith.constant 0 : i32
    %c0_i32_1 = arith.constant 0 : i32
    return %c0_i32, %c0_i32_0 : i32, i32
  }
  func.func @transform_2(%arg0: i32) -> (i32, i32) {
    %c0_i32 = arith.constant 0 : i32
    %c0_i32_0 = arith.constant 0 : i32
    %c0_i32_1 = arith.constant 0 : i32
    return %c0_i32, %c0_i32_0 : i32, i32
  }
  func.func @transform_3(%arg0: i32) -> (i32, i32) {
    %c0_i32 = arith.constant 0 : i32
    %c0_i32_0 = arith.constant 0 : i32
    %c0_i32_1 = arith.constant 0 : i32
    return %c0_i32, %c0_i32_0 : i32, i32
  }
  func.func @transform_4(%arg0: i32) -> (i32, i32) {
    %c0_i32 = arith.constant 0 : i32
    %c0_i32_0 = arith.constant 0 : i32
    %c0_i32_1 = arith.constant 0 : i32
    return %c0_i32, %c0_i32_0 : i32, i32
  }
  func.func @transform_5(%arg0: i32) -> (i32, i32) {
    %c0_i32 = arith.constant 0 : i32
    %c0_i32_0 = arith.constant 0 : i32
    return %arg0, %c0_i32 : i32, i32
  }
}

</mosaic_0001>

<bundles_post_ra>
// kernel: mlp_forward.1
= control target key start
LH: loop header
LB: loop body
LE: loop exit
PB: predicated region body
PF: predicated region fallthrough
CT: control target
= control target key end

     0   :  { %s637_s18 = smov 0   ;;  %s801_s0 = inlined_call_operand.vmem [shape: f32[16,128], index: 0, kind: input, shape index: {}]   ;;  %s802_s1 = inlined_call_operand.vmem [shape: f32[128,128], index: 1, kind: input, shape index: {}]   ;;  %s803_s2 = inlined_call_operand.vmem [shape: f32[1,128], index: 2, kind: input, shape index: {}]   ;;  %s804_s3 = inlined_call_operand.vmem [shape: f32[128,128], index: 3, kind: input, shape index: {}]   ;;  %s805_s4 = inlined_call_operand.vmem [shape: f32[1,128], index: 4, kind: input, shape index: {}]   ;;  %s806_s5 = inlined_call_operand.vmem [shape: f32[16,128], index: 5, kind: output, shape index: {}]  }
   0x1 LB: > { %s470_s19 = sadd.s32 4294967295, %s603_s18   ;;  %p474_p0 = scmp.ge.s32.totalorder %s603_s18, 1  ;;  %s603_s18 = sphi %s637_s18, %s15_s18  }
   0x2   : > { %p186_p1 = scmp.lt.s32.totalorder %s603_s18, 3 }
   0x4   : > { %p187_p2 = pnand %p474_p0, %p186_p1 }
   0x5   : > { %p212_p3 = scmp.lt.s32.totalorder (!%p187_p2), %s470_s19, 1 }
   0x6   : > { %190 = sbr.rel (%p187_p2) target bundleno = 463 (0x1cf), region = 40 }
   0xb   : > { %v238_v0 = vld [vmem:[%s802_s1 + $0x78] sm:$0xff]  ;;  %v605_v1 = vmov 0.0   ;;  %v237_v2 = vld [vmem:[%s802_s1 + $0x70] sm:$0xff]  ;;  %vm606_vm0 = vmmov 0   ;;  %v236_v3 = vld [vmem:[%s802_s1 + $0x68] sm:$0xff]  ;;  %s808_s19 = smov (!%p212_p3, %s470_s19), 1 }
   0xc   : > { %515 = vmatprep.subr.mxu0 %v605_v1  ;;  %547 = vmatprep.mubr.msk.f32.mxu0 %vm606_vm0, %v605_v1  ;;  %v235_v4 = vld [vmem:[%s802_s1 + $0x60] sm:$0xff]  ;;  %v234_v5 = vld [vmem:[%s802_s1 + $0x58] sm:$0xff]  ;;  %v233_v6 = vld [vmem:[%s802_s1 + $0x50] sm:$0xff]  ;;  %s475_s23 = sshll.u32 %s808_s19, 3 }
   0xd   : > { %516 = vmatpush3.msra.mxu0 %v238_v0  ;;  %550 = vmatprep.subr.mxu1 %v605_v1  ;;  %v232_v7 = vld [vmem:[%s802_s1 + $0x48] sm:$0xff]  ;;  %v231_v8 = vld [vmem:[%s802_s1 + $0x40] sm:$0xff]  ;;  %v230_v9 = vld [vmem:[%s802_s1 + $0x38] sm:$0xff]  ;;  %s215_s30 = scalar_lea.vmem %s801_s0, %s475_s23  ;;  %s219_s27 = scalar_lea.vmem %s806_s5, %s475_s23 }
   0xe   : > { %517 = vmatprep.subr.mxu0 %v605_v1  ;;  %582 = vmatprep.mubr.msk.f32.mxu1 %vm606_vm0, %v605_v1  ;;  %v229_v10 = vld [vmem:[%s802_s1 + $0x30] sm:$0xff]  ;;  %v228_v11 = vld [vmem:[%s802_s1 + $0x28] sm:$0xff]  ;;  %v227_v12 = vld [vmem:[%s802_s1 + $0x20] sm:$0xff] }
   0xf   : > { %518 = vmatpush3.msra.mxu0 %v237_v2  ;;  %v226_v13 = vld [vmem:[%s802_s1 + $0x18] sm:$0xff]  ;;  %v225_v14 = vld [vmem:[%s802_s1 + $0x10] sm:$0xff]  ;;  %v224_v15 = vld [vmem:[%s802_s1 + $0x8] sm:$0xff] }
  0x10   : > { %519 = vmatprep.subr.mxu0 %v605_v1  ;;  %v223_v16 = vld [vmem:[%s802_s1] sm:$0xff]  ;;  %v339_v18 = vld [vmem:[%s804_s3 + $0x78] sm:$0xff]  ;;  %v338_v19 = vld [vmem:[%s804_s3 + $0x70] sm:$0xff] }
  0x11   : > { %520 = vmatpush3.msra.mxu0 %v236_v3  ;;  %v222_v17 = vld [vmem:[%s215_s30] sm:$0xff]  ;;  %551 = vmatpush3.msra.mxu1 %v339_v18  ;;  %v337_v20 = vld [vmem:[%s804_s3 + $0x68] sm:$0xff]  ;;  %v335_v22 = vld [vmem:[%s804_s3 + $0x58] sm:$0xff] }
  0x12   : > { %521 = vmatprep.subr.mxu0 %v605_v1  ;;  %552 = vmatprep.subr.mxu1 %v605_v1  ;;  %v336_v21 = vld [vmem:[%s804_s3 + $0x60] sm:$0xff]  ;;  %v334_v23 = vld [vmem:[%s804_s3 + $0x50] sm:$0xff]  ;;  %v333_v24 = vld [vmem:[%s804_s3 + $0x48] sm:$0xff] }
  0x13   : > { %522 = vmatpush3.msra.mxu0 %v235_v4  ;;  %553 = vmatpush3.msra.mxu1 %v338_v19  ;;  %v332_v25 = vld [vmem:[%s804_s3 + $0x40] sm:$0xff]  ;;  %v331_v26 = vld [vmem:[%s804_s3 + $0x38] sm:$0xff]  ;;  %v330_v27 = vld [vmem:[%s804_s3 + $0x30] sm:$0xff] }
  0x14   : > { %523 = vmatprep.subr.mxu0 %v605_v1  ;;  %554 = vmatprep.subr.mxu1 %v605_v1  ;;  %v329_v28 = vld [vmem:[%s804_s3 + $0x28] sm:$0xff]  ;;  %v328_v29 = vld [vmem:[%s804_s3 + $0x20] sm:$0xff]  ;;  %v327_v30 = vld [vmem:[%s804_s3 + $0x18] sm:$0xff] }
  0x15   : > { %524 = vmatpush3.msra.mxu0 %v234_v5  ;;  %555 = vmatpush3.msra.mxu1 %v337_v20  ;;  %v326_v31 = vld [vmem:[%s804_s3 + $0x10] sm:$0xff]  ;;  %v325_v32 = vld [vmem:[%s804_s3 + $0x8] sm:$0xff]  ;;  %v324_v33 = vld [vmem:[%s804_s3] sm:$0xff] }
  0x16   : > { %525 = vmatprep.subr.mxu0 %v605_v1  ;;  %556 = vmatprep.subr.mxu1 %v605_v1  ;;  %v477_v34 = vld [vmem:[%s803_s2] ss:$0 sm:$0xff] }
  0x17   : > { %526 = vmatpush3.msra.mxu0 %v233_v6  ;;  %557 = vmatpush3.msra.mxu1 %v336_v21  ;;  %v478_v47 = vld [vmem:[%s805_s4] ss:$0 sm:$0xff] }
  0x18   : > { %527 = vmatprep.subr.mxu0 %v605_v1  ;;  %558 = vmatprep.subr.mxu1 %v605_v1 }
  0x19   : > { %528 = vmatpush3.msra.mxu0 %v232_v7  ;;  %559 = vmatpush3.msra.mxu1 %v335_v22 }
  0x1a   : > { %529 = vmatprep.subr.mxu0 %v605_v1  ;;  %560 = vmatprep.subr.mxu1 %v605_v1 }
  0x1b   : > { %530 = vmatpush3.msra.mxu0 %v231_v8  ;;  %561 = vmatpush3.msra.mxu1 %v334_v23 }
  0x1c   : > { %531 = vmatprep.subr.mxu0 %v605_v1  ;;  %562 = vmatprep.subr.mxu1 %v605_v1 }
  0x1d   : > { %532 = vmatpush3.msra.mxu0 %v230_v9  ;;  %563 = vmatpush3.msra.mxu1 %v333_v24 }
  0x1e   : > { %533 = vmatprep.subr.mxu0 %v605_v1  ;;  %564 = vmatprep.subr.mxu1 %v605_v1 }
  0x1f   : > { %534 = vmatpush3.msra.mxu0 %v229_v10  ;;  %565 = vmatpush3.msra.mxu1 %v332_v25 }
  0x20   : > { %535 = vmatprep.subr.mxu0 %v605_v1  ;;  %566 = vmatprep.subr.mxu1 %v605_v1 }
  0x21   : > { %536 = vmatpush3.msra.mxu0 %v228_v11  ;;  %567 = vmatpush3.msra.mxu1 %v331_v26 }
  0x22   : > { %537 = vmatprep.subr.mxu0 %v605_v1  ;;  %568 = vmatprep.subr.mxu1 %v605_v1 }
  0x23   : > { %538 = vmatpush3.msra.mxu0 %v227_v12  ;;  %569 = vmatpush3.msra.mxu1 %v330_v27 }
  0x24   : > { %539 = vmatprep.subr.mxu0 %v605_v1  ;;  %570 = vmatprep.subr.mxu1 %v605_v1 }
  0x25   : > { %540 = vmatpush3.msra.mxu0 %v226_v13  ;;  %571 = vmatpush3.msra.mxu1 %v329_v28 }
  0x26   : > { %541 = vmatprep.subr.mxu0 %v605_v1  ;;  %572 = vmatprep.subr.mxu1 %v605_v1 }
  0x27   : > { %542 = vmatpush3.msra.mxu0 %v225_v14  ;;  %573 = vmatpush3.msra.mxu1 %v328_v29 }
  0x28   : > { %543 = vmatprep.subr.mxu0 %v605_v1  ;;  %574 = vmatprep.subr.mxu1 %v605_v1 }
  0x29   : > { %544 = vmatpush3.msra.mxu0 %v224_v15  ;;  %575 = vmatpush3.msra.mxu1 %v327_v30 }
  0x2a   : > { %545 = vmatprep.subr.mxu0 %v605_v1  ;;  %576 = vmatprep.subr.mxu1 %v605_v1 }
  0x2b   : > { %546 = vmatpush3.msra.mxu0 %v223_v16  ;;  %577 = vmatpush3.msra.mxu1 %v326_v31 }
  0x2c   : > { %548 = vmatmul.mubr.f32.vlgmr.msra.gmra.mxu0 %v222_v17  ;;  %578 = vmatprep.subr.mxu1 %v605_v1 }
  0x2d   : > { %579 = vmatpush3.msra.mxu1 %v325_v32 }
  0x2e   : > { %580 = vmatprep.subr.mxu1 %v605_v1 }
  0x2f   : > { %581 = vmatpush3.msra.mxu1 %v324_v33 }
  0xec   : > { %v311_v35 = vpop.f32.mrf.mxu0 }
  0xed   : > { %v312_v36 = vadd.f32 %v477_v34, %v311_v35 }
  0xee   : > { %v549_v37 = vpop.f32.mrf.mxu0 }
  0xef   : > { %v316_v38 = vmul.f32 %v312_v36, %v312_v36  ;;  %v315_v44 = vmul.f32 0.5, %v312_v36 }
  0xf1   : > { %v317_v39 = vmul.f32 %v316_v38, %v312_v36 }
  0xf3   : > { %v318_v40 = vmul.f32 0.044715, %v317_v39 }
  0xf5   : > { %v319_v41 = vadd.f32 %v318_v40, %v312_v36 }
  0xf7   : > { %v320_v42 = vmul.f32 0.7978846, %v319_v41 }
  0xf9   : > { %595 = vtanh.f32 %v320_v42 }
 0x106   : > { %v596_v43 = vpop.eup %595 }
 0x107   : > { %v322_v45 = vadd.f32 1.0, %v596_v43 }
 0x109   : > { %v323_v46 = vmul.f32 %v322_v45, %v315_v44 }
 0x10b   : > { %583 = vmatmul.mubr.f32.vlgmr.msra.gmra.mxu1 %v323_v46 }
 0x1cb   : > { %v412_v48 = vpop.f32.mrf.mxu1 }
 0x1cc   : > { %v413_v49 = vadd.f32 %v478_v47, %v412_v48 }
 0x1cd   : > { %v584_v50 = vpop.f32.mrf.mxu1 }
 0x1ce   : > { %416 = vst [vmem:[%s219_s27] sm:$0xff] %v413_v49 }
 0x1cf PF: > { %s15_s18 = sadd.s32 1, %s603_s18  }
 0x1d0   : > { %p12_p4 = scmp.ge.s32.totalorder %s15_s18, 4  }
 0x1d2   :  { %14 = sbr.rel (!%p12_p4) target bundleno = 1 (0x1), region = 70 }

</bundles_post_ra>
